<compile_context>
chip_gen: v7x
topology: tpu7x:2x2x1
jax: 0.10.0
libtpu: 0.0.40
codegen_flags: <defaults>
</compile_context>

<pallas_src>
import math

import jax
import jax.numpy as jnp
from jax import lax
from jax.experimental import pallas as pl
from jax.experimental.pallas import tpu as pltpu


# ----------------------------------------------------------------- utilities
def _round_up(n, m):
    return ((n + m - 1) // m) * m


def _pick_tile(total, candidates):
    for c in candidates:
        if total % c == 0:
            return c
    return total


def _vmem_limit(block_shapes, dtype_bytes=4):
    # double-buffered input/output blocks + headroom, clamped to v7x's 64 MiB VMEM
    need = sum(math.prod(s) for s in block_shapes) * dtype_bytes * 2 + (4 << 20)
    return int(min(64 << 20, max(32 << 20, need)))


# ------------------------------------------------------------------- kernels
def fc_prelu_kernel(alpha_ref, x_ref, w_ref, b_ref, o_ref):
    # (TM, Cin) x (TN, Cin) -> (TM, TN) on the MXU, f32 accumulate, weight untransposed.
    y = lax.dot_general(x_ref[...], w_ref[...],
                        dimension_numbers=(((1,), (1,)), ((), ())),
                        preferred_element_type=jnp.float32)
    y = y + b_ref[...]                       # bias broadcast over rows
    a = alpha_ref[0]                         # scalar PReLU slope (SMEM)
    o_ref[...] = jnp.where(y > 0, y, a * y).astype(o_ref.dtype)


def make_fc_prelu_softmax_kernel(valid_out, cout_padded):
    need_mask = valid_out != cout_padded     # static: only emit mask ops if padded

    def kernel(alpha_ref, x_ref, w_ref, b_ref, o_ref):
        y = lax.dot_general(x_ref[...], w_ref[...],
                            dimension_numbers=(((1,), (1,)), ((), ())),
                            preferred_element_type=jnp.float32)
        y = y + b_ref[...]
        a = alpha_ref[0]
        y = jnp.where(y > 0, y, a * y)       # PReLU
        if need_mask:                        # padded lanes don't join the softmax
            col = lax.broadcasted_iota(jnp.int32, y.shape, 1)
            y = jnp.where(col < valid_out, y, -jnp.inf)
        m = jnp.max(y, axis=-1, keepdims=True)
        e = jnp.exp(y - m)
        s = jnp.sum(e, axis=-1, keepdims=True)
        o_ref[...] = (e * pl.reciprocal(s)).astype(o_ref.dtype)

    return kernel


# ------------------------------------------------------------------ wrappers
def _fc_prelu(x_p, weight, bias, alpha):
    """x_p: (Bp, Cin) with Bp % 8 == 0.  Returns padded (Bp, Coutp) output."""
    Bp, Cin = x_p.shape
    Cout = weight.shape[0]
    Coutp = _round_up(Cout, 128)

    TM = _pick_tile(Bp, (256, 128, 64, 32, 16, 8))
    TN = _pick_tile(Coutp, (512, 256, 128))

    w_p = jnp.pad(weight, ((0, Coutp - Cout), (0, 0))) if Coutp != Cout else weight
    b_p = (jnp.pad(bias, (0, Coutp - Cout)) if Coutp != Cout else bias).reshape(1, Coutp)
    alpha_arr = jnp.asarray(alpha, jnp.float32).reshape(1)

    grid = (Bp // TM, Coutp // TN)
    vmem = _vmem_limit([(TM, Cin), (TN, Cin), (1, TN), (TM, TN)])

    return pl.pallas_call(
        fc_prelu_kernel,
        out_shape=jax.ShapeDtypeStruct((Bp, Coutp), jnp.float32),
        grid_spec=pltpu.PrefetchScalarGridSpec(
            num_scalar_prefetch=0,
            grid=grid,
            in_specs=[
                pl.BlockSpec(memory_space=pltpu.SMEM),         # PReLU alpha (scalar)
                pl.BlockSpec((TM, Cin), lambda i, j: (i, 0)),   # x row tile
                pl.BlockSpec((TN, Cin), lambda i, j: (j, 0)),   # untransposed weight tile
                pl.BlockSpec((1, TN), lambda i, j: (0, j)),     # bias tile
            ],
            out_specs=pl.BlockSpec((TM, TN), lambda i, j: (i, j)),
        ),
        compiler_params=pltpu.CompilerParams(
            dimension_semantics=("parallel", "parallel"),
            vmem_limit_bytes=vmem),
    )(alpha_arr, x_p, w_p, b_p)


def _fc_prelu_softmax(x_p, weight, bias, alpha):
    """x_p: (Bp, Cin_p) (extra input columns are zero).  Fused FC + PReLU + row softmax.
    Returns padded (Bp, Coutp); padded output lanes hold 0 after the masked softmax."""
    Bp, Cin_p = x_p.shape
    Cout, Cin = weight.shape
    Coutp = _round_up(Cout, 128)

    TM = _pick_tile(Bp, (256, 128, 64, 32, 16, 8))

    if Coutp != Cout or Cin_p != Cin:
        w_p = jnp.pad(weight, ((0, Coutp - Cout), (0, Cin_p - Cin)))
    else:
        w_p = weight
    b_p = (jnp.pad(bias, (0, Coutp - Cout)) if Coutp != Cout else bias).reshape(1, Coutp)
    alpha_arr = jnp.asarray(alpha, jnp.float32).reshape(1)

    grid = (Bp // TM,)
    vmem = _vmem_limit([(TM, Cin_p), (Coutp, Cin_p), (1, Coutp), (TM, Coutp)])
    kernel = make_fc_prelu_softmax_kernel(Cout, Coutp)

    return pl.pallas_call(
        kernel,
        out_shape=jax.ShapeDtypeStruct((Bp, Coutp), jnp.float32),
        grid_spec=pltpu.PrefetchScalarGridSpec(
            num_scalar_prefetch=0,
            grid=grid,
            in_specs=[
                pl.BlockSpec(memory_space=pltpu.SMEM),             # PReLU alpha
                pl.BlockSpec((TM, Cin_p), lambda i: (i, 0)),        # activation row tile
                pl.BlockSpec((Coutp, Cin_p), lambda i: (0, 0)),     # full weight (stays resident)
                pl.BlockSpec((1, Coutp), lambda i: (0, 0)),         # bias
            ],
            out_specs=pl.BlockSpec((TM, Coutp), lambda i: (i, 0)),  # lane-dense full-row block
        ),
        compiler_params=pltpu.CompilerParams(
            dimension_semantics=("parallel",),
            vmem_limit_bytes=vmem),
    )(alpha_arr, x_p, w_p, b_p)


def gdn_forward(x, w1, b1, a1, w2, b2, a2):
    """GDN.forward: returns (intermediate, softmax(fc2(intermediate), dim=1))."""
    B, _ = x.shape
    d_inter = w1.shape[0]
    d_out = w2.shape[0]

    Bp = _round_up(B, 8)
    x_p = jnp.pad(x, ((0, Bp - B), (0, 0))) if Bp != B else x

    inter_p = _fc_prelu(x_p, w1, b1, a1)             # (Bp, d_inter padded)
    soft_p = _fc_prelu_softmax(inter_p, w2, b2, a2)  # (Bp, d_out padded)

    intermediate = inter_p[:B, :d_inter]
    soft = soft_p[:B, :d_out]
    return intermediate, soft


if __name__ == "__main__":
    # Small shapes consistent with GDN(inplanes, outplanes, intermediate_dim=256)
    B, inplanes, intermediate_dim, outplanes = 8, 32, 256, 64

    key = jax.random.PRNGKey(0)
    kx, kw1, kb1, kw2, kb2 = jax.random.split(key, 5)

    x = jax.random.normal(kx, (B, inplanes), dtype=jnp.float32)

    # PyTorch-Linear-style uniform init, deterministic
    bnd1 = 1.0 / float(inplanes) ** 0.5
    w1 = jax.random.uniform(kw1, (intermediate_dim, inplanes), jnp.float32, -bnd1, bnd1)
    b1 = jax.random.uniform(kb1, (intermediate_dim,), jnp.float32, -bnd1, bnd1)
    bnd2 = 1.0 / float(intermediate_dim) ** 0.5
    w2 = jax.random.uniform(kw2, (outplanes, intermediate_dim), jnp.float32, -bnd2, bnd2)
    b2 = jax.random.uniform(kb2, (outplanes,), jnp.float32, -bnd2, bnd2)
    a1 = 0.25  # nn.PReLU() default single-parameter init
    a2 = 0.25

    inter, soft = jax.block_until_ready(gdn_forward(x, w1, b1, a1, w2, b2, a2))

    # Plain-JAX reference
    h = x @ w1.T + b1
    h = jnp.where(h > 0, h, a1 * h)
    o = h @ w2.T + b2
    o = jnp.where(o > 0, o, a2 * o)
    p = jax.nn.softmax(o, axis=1)

    assert inter.shape == (B, intermediate_dim) and soft.shape == (B, outplanes)
    assert jnp.allclose(inter, h, atol=1e-4, rtol=1e-4)
    assert jnp.allclose(soft, p, atol=1e-4, rtol=1e-4)
    assert jnp.allclose(soft.sum(axis=1), 1.0, atol=1e-5)

    print("KERNEL_OK")
</pallas_src>

<mosaic_0001>
module attributes {stable_mosaic.version = 11 : i64} {
  func.func @fc_prelu_kernel(%arg0: i32, %arg1: i32, %arg2: memref<1xf32, #tpu.memory_space<smem>>, %arg3: memref<8x32xf32, #tpu.memory_space<vmem>>, %arg4: memref<256x32xf32, #tpu.memory_space<vmem>>, %arg5: memref<1x256xf32, #tpu.memory_space<vmem>>, %arg6: memref<8x256xf32, #tpu.memory_space<vmem>>) attributes {dimension_semantics = [#tpu.dimension_semantics<parallel>, #tpu.dimension_semantics<parallel>], iteration_bounds = array<i64: 1, 1>, scalar_prefetch = 0 : i64, scratch_operands = 0 : i64, tpu.core_type = #tpu.core_type<tc>, window_params = [{transform_indices = @transform_0, window_bounds = array<i64: 1>}, {transform_indices = @transform_1, window_bounds = array<i64: 8, 32>}, {transform_indices = @transform_2, window_bounds = array<i64: 256, 32>}, {transform_indices = @transform_3, window_bounds = array<i64: 1, 256>}, {transform_indices = @transform_4, window_bounds = array<i64: 8, 256>}]} {
    %c0 = arith.constant 0 : index
    %c0_0 = arith.constant 0 : index
    %0 = vector.load %arg3[%c0, %c0_0] : memref<8x32xf32, #tpu.memory_space<vmem>>, vector<8x32xf32>
    %c0_1 = arith.constant 0 : index
    %c0_2 = arith.constant 0 : index
    %1 = vector.load %arg4[%c0_1, %c0_2] : memref<256x32xf32, #tpu.memory_space<vmem>>, vector<256x32xf32>
    %cst = arith.constant dense<0.000000e+00> : vector<8x256xf32>
    %2 = tpu.matmul %0, %1, %cst {dimension_numbers = #tpu.dot_dimension_numbers<[1], [1], [0], [0], [0, 0, 1, 0], [], []>} : vector<8x32xf32>, vector<256x32xf32>, vector<8x256xf32> -> vector<8x256xf32>
    %c0_3 = arith.constant 0 : index
    %c0_4 = arith.constant 0 : index
    %3 = vector.load %arg5[%c0_3, %c0_4] : memref<1x256xf32, #tpu.memory_space<vmem>>, vector<1x256xf32>
    %4 = vector.broadcast %3 : vector<1x256xf32> to vector<8x256xf32>
    %5 = arith.addf %2, %4 : vector<8x256xf32>
    %c0_5 = arith.constant 0 : index
    %6 = memref.load %arg2[%c0_5] : memref<1xf32, #tpu.memory_space<smem>>
    %cst_6 = arith.constant 0.000000e+00 : f32
    %7 = vector.broadcast %cst_6 : f32 to vector<8x256xf32>
    %8 = arith.cmpf ogt, %5, %7 : vector<8x256xf32>
    %9 = vector.broadcast %6 : f32 to vector<8x256xf32>
    %10 = arith.mulf %9, %5 : vector<8x256xf32>
    %11 = arith.select %8, %5, %10 : vector<8x256xi1>, vector<8x256xf32>
    %c0_7 = arith.constant 0 : index
    %c0_8 = arith.constant 0 : index
    %12 = vector.load %arg6[%c0_7, %c0_8] : memref<8x256xf32, #tpu.memory_space<vmem>>, vector<8x256xf32>
    tpu.vector_store %arg6[%c0_7, %c0_8], %11 {strides = array<i32>} : memref<8x256xf32, #tpu.memory_space<vmem>>, vector<8x256xf32>,
    return
  }
  func.func @transform_0(%arg0: i32, %arg1: i32) -> i32 {
    %c0_i32 = arith.constant 0 : i32
    %c0_i32_0 = arith.constant 0 : i32
    return %c0_i32 : i32
  }
  func.func @transform_1(%arg0: i32, %arg1: i32) -> (i32, i32) {
    %c0_i32 = arith.constant 0 : i32
    %c0_i32_0 = arith.constant 0 : i32
    return %arg0, %c0_i32 : i32, i32
  }
  func.func @transform_2(%arg0: i32, %arg1: i32) -> (i32, i32) {
    %c0_i32 = arith.constant 0 : i32
    %c0_i32_0 = arith.constant 0 : i32
    return %arg1, %c0_i32 : i32, i32
  }
  func.func @transform_3(%arg0: i32, %arg1: i32) -> (i32, i32) {
    %c0_i32 = arith.constant 0 : i32
    %c0_i32_0 = arith.constant 0 : i32
    return %c0_i32, %arg1 : i32, i32
  }
  func.func @transform_4(%arg0: i32, %arg1: i32) -> (i32, i32) {
    %c0_i32 = arith.constant 0 : i32
    return %arg0, %arg1 : i32, i32
  }
}

</mosaic_0001>

<bundles_post_ra>
// kernel: tpu_custom_call.1
= control target key start
LH: loop header
LB: loop body
LE: loop exit
PB: predicated region body
PF: predicated region fallthrough
CT: control target
= control target key end

     0   :  { %vm64_vm0 = vcmask 261120   ;;  %s582_s0 = inlined_call_operand.<no memory space> [shape: f32[1], index: 0, kind: input, shape index: {}]   ;;  %s583_s1 = inlined_call_operand.vmem [shape: f32[8,32], index: 1, kind: input, shape index: {}]   ;;  %s584_s2 = inlined_call_operand.vmem [shape: f32[256,32], index: 2, kind: input, shape index: {}]   ;;  %s585_s3 = inlined_call_operand.vmem [shape: f32[1,256], index: 3, kind: input, shape index: {}]   ;;  %s586_s4 = inlined_call_operand.hbm [shape: f32[8,256], index: 4, kind: output, shape index: {}]  }
   0x1   :  { %v36_v0 = vld [vmem:[%s584_s2 + $0x80] sm:$0xff]  ;;  %v37_v1 = vld [vmem:[%s584_s2 + $0x88] sm:$0xff]  ;;  %vm436_vm1 = vmpackc.low %vm64_vm0, %vm64_vm0 }
   0x2   :  { %v20_v2 = vld [vmem:[%s584_s2] sm:$0xff]  ;;  %v326_v3 = vpack.c.bf16 %v37_v1, %v36_v0  ;;  %v21_v5 = vld [vmem:[%s584_s2 + $0x8] sm:$0xff]  ;;  %v38_v6 = vld [vmem:[%s584_s2 + $0x90] sm:$0xff] }
   0x3   :  { %v329_v7 = vpack.c.bf16 %v21_v5, %v20_v2  ;;  %v39_v8 = vld [vmem:[%s584_s2 + $0x98] sm:$0xff]  ;;  %v22_v10 = vld [vmem:[%s584_s2 + $0x10] sm:$0xff]  ;;  %v40_v12 = vld [vmem:[%s584_s2 + $0xa0] sm:$0xff] }
   0x4   :  { %328 = vmatprep.subr.msk.bf16.mxu0 %vm436_vm1, %v326_v3  ;;  %v332_v9 = vpack.c.bf16 %v39_v8, %v38_v6  ;;  %v23_v11 = vld [vmem:[%s584_s2 + $0x18] sm:$0xff]  ;;  %v41_v13 = vld [vmem:[%s584_s2 + $0xa8] sm:$0xff]  ;;  %v19_v16 = vld [vmem:[%s583_s1] sm:$0xff] }
   0x5   :  { %331 = vmatpush3.bf16.xpose.msk.msra.mxu0 %vm436_vm1, %v329_v7  ;;  %v335_v14 = vpack.c.bf16 %v23_v11, %v22_v10  ;;  %v338_v15 = vpack.c.bf16 %v41_v13, %v40_v12 }
   0x6   :  { %334 = vmatprep.subr.msk.bf16.mxu0 %vm436_vm1, %v332_v9 }
   0x7   :  { %10 = vsyncpa [#allocation4], 0  ;;  %324 = vmatprep.mubr.msk.f32.mxu0 %vm64_vm0, %v19_v16  ;;  %v24_v17 = vld [vmem:[%s584_s2 + $0x20] sm:$0xff]  ;;  %v25_v18 = vld [vmem:[%s584_s2 + $0x28] sm:$0xff]  ;;  %v54_v50 = vlaneseq  ;;  %v238_v58 = vstv %s582_s0 }
   0x8   :  { %v42_v19 = vld [vmem:[%s584_s2 + $0xb0] sm:$0xff]  ;;  %v43_v20 = vld [vmem:[%s584_s2 + $0xb8] sm:$0xff]  ;;  %v341_v21 = vpack.c.bf16 %v25_v18, %v24_v17  ;;  %v44_v25 = vld [vmem:[%s584_s2 + $0xc0] sm:$0xff] }
   0x9   :  { %v344_v22 = vpack.c.bf16 %v43_v20, %v42_v19  ;;  %v26_v23 = vld [vmem:[%s584_s2 + $0x30] sm:$0xff]  ;;  %v27_v24 = vld [vmem:[%s584_s2 + $0x38] sm:$0xff]  ;;  %v45_v26 = vld [vmem:[%s584_s2 + $0xc8] sm:$0xff]  ;;  %v55_v51 = vshrl.u32 %v54_v50, 7 }
   0xa   :  { %v347_v27 = vpack.c.bf16 %v27_v24, %v26_v23  ;;  %v350_v28 = vpack.c.bf16 %v45_v26, %v44_v25  ;;  %v28_v29 = vld [vmem:[%s584_s2 + $0x40] sm:$0xff]  ;;  %v29_v30 = vld [vmem:[%s584_s2 + $0x48] sm:$0xff]  ;;  %v46_v31 = vld [vmem:[%s584_s2 + $0xd0] sm:$0xff] }
   0xb   :  { %v47_v32 = vld [vmem:[%s584_s2 + $0xd8] sm:$0xff]  ;;  %v353_v33 = vpack.c.bf16 %v29_v30, %v28_v29  ;;  %v30_v35 = vld [vmem:[%s584_s2 + $0x50] sm:$0xff]  ;;  %v48_v37 = vld [vmem:[%s584_s2 + $0xe0] sm:$0xff]  ;;  %v56_v52 = vsub.s32 0, %v55_v51  ;;  %v60_v54 = vsub.s32 1, %v55_v51 }
   0xc   :  { %v356_v34 = vpack.c.bf16 %v47_v32, %v46_v31  ;;  %v31_v36 = vld [vmem:[%s584_s2 + $0x58] sm:$0xff]  ;;  %v49_v38 = vld [vmem:[%s584_s2 + $0xe8] sm:$0xff]  ;;  %v32_v41 = vld [vmem:[%s584_s2 + $0x60] sm:$0xff] }
   0xd   :  { %337 = vmatpush3.bf16.xpose.msk.msra.mxu0 %vm436_vm1, %v335_v14  ;;  %v359_v39 = vpack.c.bf16 %v31_v36, %v30_v35  ;;  %v362_v40 = vpack.c.bf16 %v49_v38, %v48_v37  ;;  %v33_v42 = vld [vmem:[%s584_s2 + $0x68] sm:$0xff]  ;;  %v50_v43 = vld [vmem:[%s584_s2 + $0xf0] sm:$0xff]  ;;  %v51_v44 = vld [vmem:[%s584_s2 + $0xf8] sm:$0xff] }
   0xe   :  { %340 = vmatprep.subr.msk.bf16.mxu0 %vm436_vm1, %v338_v15  ;;  %v365_v45 = vpack.c.bf16 %v33_v42, %v32_v41  ;;  %v368_v46 = vpack.c.bf16 %v51_v44, %v50_v43  ;;  %v34_v47 = vld [vmem:[%s584_s2 + $0x70] sm:$0xff]  ;;  %v35_v48 = vld [vmem:[%s584_s2 + $0x78] sm:$0xff]  ;;  %v52_v53 = vld [vmem:[%s585_s3] sm:$0x3]  ;;  %s399_s2 = smov [#allocation3]  }
   0xf   :  { %v371_v49 = vpack.c.bf16 %v35_v48, %v34_v47  ;;  %v57_v55 = vrot.slane %v52_v53, %v56_v52  ;;  %v61_v56 = vrot.slane %v52_v53, %v60_v54  ;;  %s251_s5 = sshll.u32 %s399_s2, 4  ;;  %s252_s5 = int_to_ptr.vmem [resolvable:$true] %s251_s5 }
  0x10   :  { %s375_s3 = scalar_lea.vmem %s252_s5, 256  ;;  %p380_p1 = scmp.lt.s32.totalorder %s252_s5, %s252_s5 }
  0x11   :  { %p376_p0 = scmp.ne.s32.totalorder %s252_s5, %s375_s3  ;;  %p381_p2 = scmp.lt.s32.totalorder %s375_s3, %s375_s3 }
  0x13   :  { %p382_p3 = por %p381_p2, %p380_p1 }
  0x15   :  { %343 = vmatpush3.bf16.xpose.msk.msra.mxu0 %vm436_vm1, %v341_v21  ;;  %p383_p4 = pnand %p382_p3, %p376_p0 }
  0x16   :  { %346 = vmatprep.subr.msk.bf16.mxu0 %vm436_vm1, %v344_v22 }
  0x1d   :  { %349 = vmatpush3.bf16.xpose.msk.msra.mxu0 %vm436_vm1, %v347_v27 }
  0x1e   :  { %352 = vmatprep.subr.msk.bf16.mxu0 %vm436_vm1, %v350_v28 }
  0x25   :  { %355 = vmatpush3.bf16.xpose.msk.msra.mxu0 %vm436_vm1, %v353_v33 }
  0x26   :  { %358 = vmatprep.subr.msk.bf16.mxu0 %vm436_vm1, %v356_v34 }
  0x2d   :  { %361 = vmatpush3.bf16.xpose.msk.msra.mxu0 %vm436_vm1, %v359_v39 }
  0x2e   :  { %364 = vmatprep.subr.msk.bf16.mxu0 %vm436_vm1, %v362_v40 }
  0x35   :  { %367 = vmatpush3.bf16.xpose.msk.msra.mxu0 %vm436_vm1, %v365_v45 }
  0x36   :  { %370 = vmatprep.subr.msk.bf16.mxu0 %vm436_vm1, %v368_v46 }
  0x3d   :  { %373 = vmatpush3.bf16.xpose.msk.msra.mxu0 %vm436_vm1, %v371_v49 }
  0x44   :  { %325 = vmatmul.mubr.msk.f32.vlgmr.msra.gmra.mrb[0].mxu0 %vm64_vm0, %v19_v16 }
 0x117   :  { %v230_v57 = vpop.f32.mrb[0].mxu0 }
 0x118   :  { %v231_v59 = vadd.f32 %v230_v57, %v57_v55  ;;  %v232_v60 = vpop.f32.mrb[1].mxu0 }
 0x119   :  { %v233_v61 = vadd.f32 %v232_v60, %v61_v56 }
 0x11a   :  { %vm236_vm2 = vcmp.gt.f32.partialorder %v231_v59, 0.0  ;;  %v239_v62 = vmul.f32 %v238_v58, %v231_v59 }
 0x11b   :  { %vm237_vm3 = vcmp.gt.f32.partialorder %v233_v61, 0.0  ;;  %v240_v63 = vmul.f32 %v238_v58, %v233_v61 }
 0x11c   :  { %v241_v0 = vsel %vm236_vm2, %v231_v59, %v239_v62 }
 0x11d   :  { %v242_v1 = vsel %vm237_vm3, %v233_v61, %v240_v63  ;;  %243 = vst [vmem:[#allocation3] sm:$0xff] %v241_v0 }
 0x11e   :  { %244 = vst [vmem:[#allocation3 + $0x8] sm:$0xff] %v242_v1 }
 0x11f   :  { %386 = shalt.err (!%p383_p4)
}
 0x120   :  { %s387_s7 = scalar_lea.hbm %s586_s4, 256 }
 0x121   :  { %p388_p5 = scmp.ne.s32.totalorder %s586_s4, %s387_s7  ;;  %p391_p6 = scmp.lt.u32.totalorder %s387_s7, %s586_s4 }
 0x123   :  { %p393_p7 = pnand %p391_p6, %p388_p5 }
 0x125   :  { %396 = shalt.err (!%p393_p7)
}
 0x126   :  { %254 = dma.vmem_to_hbm [thread:$0]  %s252_s5, 256, %s586_s4, [#allocation4]  }
 0x127   :  { %397 = dma.done.wait [#allocation4], 256  }
 0x128   :  { %398 = vsyncadd [#allocation4], 4294967040 }
 0x129   :  { %258 = vsyncpa [#allocation4], 1 }

</bundles_post_ra>
